<compile_context>
chip_gen: v6e
topology: v6e:2x2x1
jax: 0.10.0
libtpu: 0.0.40
codegen_flags: <defaults>
</compile_context>

<pallas_src>
from functools import partial

import jax
import jax.numpy as jnp
from jax import lax
from jax.experimental import pallas as pl
from jax.experimental.pallas import tpu as pltpu


def _layernorm_kernel(eps, inv_c, x_ref, g_ref, o_ref):
    # Fast path:  x_ref (1, C, TR, 128), g_ref (1, C, 1, 1), o_ref (1, C, TR, 128)
    # Fallback :  x_ref (1, C, HW),      g_ref (1, C, 1),    o_ref (1, C, HW)
    # In both cases the reduction axis is axis=1 (channels).
    x = x_ref[...].astype(jnp.float32)
    g = g_ref[...].astype(jnp.float32)

    # Single-pass statistics over channels (f32 accumulation).
    sum_x = jnp.sum(x, axis=1, keepdims=True)
    sum_xx = jnp.sum(x * x, axis=1, keepdims=True)
    mean = sum_x * inv_c
    var = jnp.maximum(sum_xx * inv_c - mean * mean, 0.0)  # unbiased=False
    inv_std = lax.rsqrt(var + eps)

    # Fold gamma into the per-position scale once per tile.
    scale = g * inv_std
    o_ref[...] = ((x - mean) * scale).astype(o_ref.dtype)


def _pick_tile_rows(R, C):
    """Rows (of 128 lanes) per spatial tile.

    Keeps the f32 working block at ~2 MiB max, the sublane block dim either a
    multiple of 8 or equal to the full row extent (the (8,128) rule), and an
    integral grid (tr divides R).
    """
    budget_rows = max(8, (2 << 20) // (C * 128 * 4))
    if R <= budget_rows:
        return R
    tr = (budget_rows // 8) * 8
    while tr >= 8:
        if R % tr == 0:
            return tr
        tr -= 8
    # No multiple-of-8 divisor: take the whole row axis (block == array dim).
    return R


def layer_norm(x, g):
    """x: (N, C, H, W) NCHW; g: (1, C, 1, 1). Returns same shape/dtype as x."""
    N, C, H, W = x.shape
    HW = H * W
    # PyTorch reference: eps depends on input dtype (this module's convention).
    eps = 1e-05 if x.dtype == jnp.float32 else 1e-03
    inv_c = 1.0 / C
    kernel = partial(_layernorm_kernel, eps, inv_c)
    itemsize = jnp.dtype(x.dtype).itemsize

    if HW % 128 == 0:
        R = HW // 128
        tr = _pick_tile_rows(R, C)

        io_bytes = C * tr * 128 * itemsize          # one in/out block
        work_bytes = C * tr * 128 * 4               # f32 working copy
        vmem_limit = int(min(max(4 * io_bytes + 8 * work_bytes + (4 << 20),
                                 16 << 20), 64 << 20))

        x4 = x.reshape(N, C, R, 128)
        g4 = g.reshape(1, C, 1, 1)

        out = pl.pallas_call(
            kernel,
            out_shape=jax.ShapeDtypeStruct((N, C, R, 128), x.dtype),
            grid_spec=pltpu.PrefetchScalarGridSpec(
                num_scalar_prefetch=0,
                grid=(N, R // tr),
                in_specs=[
                    pl.BlockSpec((1, C, tr, 128), lambda n, t: (n, 0, t, 0)),
                    pl.BlockSpec((1, C, 1, 1), lambda n, t: (0, 0, 0, 0)),
                ],
                out_specs=pl.BlockSpec((1, C, tr, 128), lambda n, t: (n, 0, t, 0)),
            ),
            compiler_params=pltpu.CompilerParams(
                dimension_semantics=("parallel", "parallel"),
                vmem_limit_bytes=vmem_limit,
            ),
        )(x4, g4)
        return out.reshape(N, C, H, W)

    # Fallback: HW not lane-aligned -> whole-image block (block dims == array dims).
    io_bytes = C * HW * itemsize
    work_bytes = C * HW * 4
    vmem_limit = int(min(max(4 * io_bytes + 8 * work_bytes + (4 << 20),
                             16 << 20), 64 << 20))
    x3 = x.reshape(N, C, HW)
    g3 = g.reshape(1, C, 1)
    out = pl.pallas_call(
        kernel,
        out_shape=jax.ShapeDtypeStruct((N, C, HW), x.dtype),
        grid_spec=pltpu.PrefetchScalarGridSpec(
            num_scalar_prefetch=0,
            grid=(N,),
            in_specs=[
                pl.BlockSpec((1, C, HW), lambda n: (n, 0, 0)),
                pl.BlockSpec((1, C, 1), lambda n: (0, 0, 0)),
            ],
            out_specs=pl.BlockSpec((1, C, HW), lambda n: (n, 0, 0)),
        ),
        compiler_params=pltpu.CompilerParams(
            dimension_semantics=("parallel",),
            vmem_limit_bytes=vmem_limit,
        ),
    )(x3, g3)
    return out.reshape(N, C, H, W)


if __name__ == "__main__":
    key = jax.random.PRNGKey(0)
    N, C, H, W = 2, 4, 16, 16

    x = jax.random.normal(key, (N, C, H, W), dtype=jnp.float32)
    # nn.Parameter(torch.ones(1, dim, 1, 1)) -> deterministic ones
    g = jnp.ones((1, C, 1, 1), dtype=jnp.float32)

    out = layer_norm(x, g)
    out = jax.block_until_ready(out)

    # Reference check in plain JAX (same math as the PyTorch module).
    mean = jnp.mean(x, axis=1, keepdims=True)
    var = jnp.mean((x - mean) ** 2, axis=1, keepdims=True)
    ref = (x - mean) * lax.rsqrt(var + 1e-05) * g
    assert out.shape == x.shape and out.dtype == x.dtype
    assert jnp.allclose(out, ref, atol=1e-4, rtol=1e-4)

    print("KERNEL_OK")
</pallas_src>

<mosaic_0001>
module attributes {stable_mosaic.version = 11 : i64} {
  func.func @_layernorm_kernel(%arg0: i32, %arg1: i32, %arg2: memref<1x4x2x128xf32, #tpu.memory_space<vmem>>, %arg3: memref<1x4x1x1xf32, #tpu.memory_space<vmem>>, %arg4: memref<1x4x2x128xf32, #tpu.memory_space<vmem>>) attributes {dimension_semantics = [#tpu.dimension_semantics<parallel>, #tpu.dimension_semantics<parallel>], iteration_bounds = array<i64: 2, 1>, scalar_prefetch = 0 : i64, scratch_operands = 0 : i64, tpu.core_type = #tpu.core_type<tc>, window_params = [{transform_indices = @transform_0, window_bounds = array<i64: 1, 4, 2, 128>}, {pipeline_mode = #tpu.pipeline_mode<synchronous>, transform_indices = @transform_1, window_bounds = array<i64: 1, 4, 1, 1>}, {transform_indices = @transform_2, window_bounds = array<i64: 1, 4, 2, 128>}]} {
    %c0 = arith.constant 0 : index
    %c0_0 = arith.constant 0 : index
    %c0_1 = arith.constant 0 : index
    %c0_2 = arith.constant 0 : index
    %0 = vector.load %arg2[%c0, %c0_0, %c0_1, %c0_2] : memref<1x4x2x128xf32, #tpu.memory_space<vmem>>, vector<1x4x2x128xf32>
    %c0_3 = arith.constant 0 : index
    %c0_4 = arith.constant 0 : index
    %c0_5 = arith.constant 0 : index
    %c0_6 = arith.constant 0 : index
    %1 = vector.load %arg3[%c0_3, %c0_4, %c0_5, %c0_6] : memref<1x4x1x1xf32, #tpu.memory_space<vmem>>, vector<1x4x1x1xf32>
    %cst = arith.constant dense<0.000000e+00> : vector<1x2x128xf32>
    %2 = vector.multi_reduction <add>, %0, %cst [1] : vector<1x4x2x128xf32> to vector<1x2x128xf32>
    %3 = vector.shape_cast %2 : vector<1x2x128xf32> to vector<1x1x2x128xf32>
    %4 = arith.mulf %0, %0 : vector<1x4x2x128xf32>
    %cst_7 = arith.constant dense<0.000000e+00> : vector<1x2x128xf32>
    %5 = vector.multi_reduction <add>, %4, %cst_7 [1] : vector<1x4x2x128xf32> to vector<1x2x128xf32>
    %6 = vector.shape_cast %5 : vector<1x2x128xf32> to vector<1x1x2x128xf32>
    %cst_8 = arith.constant 2.500000e-01 : f32
    %7 = vector.broadcast %cst_8 : f32 to vector<1x1x2x128xf32>
    %8 = arith.mulf %3, %7 : vector<1x1x2x128xf32>
    %cst_9 = arith.constant 2.500000e-01 : f32
    %9 = vector.broadcast %cst_9 : f32 to vector<1x1x2x128xf32>
    %10 = arith.mulf %6, %9 : vector<1x1x2x128xf32>
    %11 = arith.mulf %8, %8 : vector<1x1x2x128xf32>
    %12 = arith.subf %10, %11 : vector<1x1x2x128xf32>
    %cst_10 = arith.constant 0.000000e+00 : f32
    %13 = vector.broadcast %cst_10 : f32 to vector<1x1x2x128xf32>
    %14 = arith.maximumf %12, %13 : vector<1x1x2x128xf32>
    %cst_11 = arith.constant 9.99999974E-6 : f32
    %15 = vector.broadcast %cst_11 : f32 to vector<1x1x2x128xf32>
    %16 = arith.addf %14, %15 : vector<1x1x2x128xf32>
    %17 = math.rsqrt %16 : vector<1x1x2x128xf32>
    %18 = vector.broadcast %1 : vector<1x4x1x1xf32> to vector<1x4x2x128xf32>
    %19 = vector.broadcast %17 : vector<1x1x2x128xf32> to vector<1x4x2x128xf32>
    %20 = arith.mulf %18, %19 : vector<1x4x2x128xf32>
    %21 = vector.broadcast %8 : vector<1x1x2x128xf32> to vector<1x4x2x128xf32>
    %22 = arith.subf %0, %21 : vector<1x4x2x128xf32>
    %23 = arith.mulf %22, %20 : vector<1x4x2x128xf32>
    %c0_12 = arith.constant 0 : index
    %c0_13 = arith.constant 0 : index
    %c0_14 = arith.constant 0 : index
    %c0_15 = arith.constant 0 : index
    %24 = vector.load %arg4[%c0_12, %c0_13, %c0_14, %c0_15] : memref<1x4x2x128xf32, #tpu.memory_space<vmem>>, vector<1x4x2x128xf32>
    tpu.vector_store %arg4[%c0_12, %c0_13, %c0_14, %c0_15], %23 {strides = array<i32>} : memref<1x4x2x128xf32, #tpu.memory_space<vmem>>, vector<1x4x2x128xf32>,
    return
  }
  func.func @transform_0(%arg0: i32, %arg1: i32) -> (i32, i32, i32, i32) {
    %c0_i32 = arith.constant 0 : i32
    %c0_i32_0 = arith.constant 0 : i32
    %c0_i32_1 = arith.constant 0 : i32
    return %arg0, %c0_i32, %arg1, %c0_i32_0 : i32, i32, i32, i32
  }
  func.func @transform_1(%arg0: i32, %arg1: i32) -> (i32, i32, i32, i32) {
    %c0_i32 = arith.constant 0 : i32
    %c0_i32_0 = arith.constant 0 : i32
    %c0_i32_1 = arith.constant 0 : i32
    %c0_i32_2 = arith.constant 0 : i32
    %c0_i32_3 = arith.constant 0 : i32
    return %c0_i32, %c0_i32_0, %c0_i32_1, %c0_i32_2 : i32, i32, i32, i32
  }
  func.func @transform_2(%arg0: i32, %arg1: i32) -> (i32, i32, i32, i32) {
    %c0_i32 = arith.constant 0 : i32
    %c0_i32_0 = arith.constant 0 : i32
    %c0_i32_1 = arith.constant 0 : i32
    return %arg0, %c0_i32, %arg1, %c0_i32_0 : i32, i32, i32, i32
  }
}

</mosaic_0001>

<bundles_post_ra>
// kernel: tpu_custom_call.1
= control target key start
LH: loop header
LB: loop body
LE: loop exit
PB: predicated region body
PF: predicated region fallthrough
CT: control target
= control target key end

     0   :  { %7 = vsyncpa [#allocation3], 0  ;;  %s759_s0 = inlined_call_operand.hbm [shape: f32[2,4,2,128], index: 0, kind: input, shape index: {}]   ;;  %s760_s1 = inlined_call_operand.vmem [shape: f32[1,4,1,1], index: 1, kind: input, shape index: {}]   ;;  %s761_s2 = inlined_call_operand.hbm [shape: f32[2,4,2,128], index: 2, kind: output, shape index: {}]  }
   0x1   :  { %9 = vsyncpa [#allocation3 + $0x1], 0 }
   0x2   :  { %10 = vsyncpa [#allocation4], 0 }
   0x3   :  { %12 = vsyncpa [#allocation4 + $0x1], 0  ;;  %s589_s9 = smov 0   ;;  %s591_s10 = smov 0  }
   0x4   :  { %s593_s11 = smov 0   ;;  %s595_s12 = smov 0  }
   0x5   :  { %s597_s13 = smov 0   ;;  %s599_s14 = smov 0  }
   0x6 LB: > { %s365_s15 = sadd.s32 4294967295, %s565_s14   ;;  %s366_s16 = sadd.s32 4294967294, %s565_s14   ;;  %s565_s14 = sphi %s599_s14, %s18_s14   ;;  %s561_s13 = sphi %s597_s13, %s772_s13   ;;  %s557_s12 = sphi %s595_s12, %s771_s12   ;;  %s553_s11 = sphi %s593_s11, %s770_s11   ;;  %s549_s10 = sphi %s591_s10, %s769_s10   ;;  %s545_s9 = sphi %s589_s9, %s768_s9  }
   0x7   : > { %s30_s17 = sadd.s32 1, %s561_s13  ;;  %s39_s18 = sadd.s32 1, %s553_s11 }
   0x8   : > { %p32_p0 = scmp.ge.s32.totalorder %s30_s17, 2  ;;  %p46_p1 = scmp.ne.s32.totalorder %s553_s11, %s549_s10 }
   0x9   : > { %p47_p2 = scmp.eq.s32.totalorder %s565_s14, 0  ;;  %p52_p3 = scmp.ne.s32.totalorder %s549_s10, %s545_s9 }
   0xa   : > { %s774_s17 = smov (%p32_p0, %s30_s17), 0  ;;  %p53_p5 = scmp.eq.s32.totalorder %s365_s15, 0 }
   0xb   : > { %p630_p4 = por %p47_p2, %p46_p1  ;;  %s34_s20 = ssub.s32 %s561_s13, %s774_s17 }
   0xc   : > { %p99_p6 = scmp.eq.s32.totalorder %s365_s15, 1  ;;  %p37_p7 = scmp.eq.s32.totalorder %s34_s20, 0 }
   0xd   : > { %p636_p8 = por %p53_p5, %p52_p3  ;;  %p105_p10 = scmp.eq.s32.totalorder %s366_s16, 1 }
   0xe   : > { %p640_p9 = por %p99_p6, %p46_p1  ;;  %p398_p13 = scmp.lt.s32.totalorder %s565_s14, 2 }
   0xf   : > { %s645_s23 = scalar_select %p37_p7, %s553_s11, %s39_s18  }
  0x10   : > { %p647_p11 = por %p105_p10, %p52_p3  ;;  %s128_s25 = sand.u32 1, %s553_s11  }
  0x11   : > { %s369_s26 = sshll.u32 %s128_s25, 3  ;;  %s384_s27 = sshll.u32 %s561_s13, 7 }
  0x12   : > { %s139_s30 = scalar_lea.hbm %s759_s0, %s384_s27  ;;  %s132_s3 = scalar_lea.vmem [#allocation2], %s369_s26 }
  0x13   : > { %s140_s4 = sshll.u32 %s132_s3, 4  ;;  %p660_p0 = pnand %p398_p13, %p630_p4  ;;  %s141_s4 = int_to_ptr.vmem [resolvable:$true] %s140_s4 }
  0x14   : > { %p372_p1 = scmp.ge.s32.totalorder %s565_s14, 1  ;;  %s129_s6 = scalar_lea.sflag [#allocation3], %s128_s25 }
  0x15   : > { %p459_p2 = pneg %p660_p0  ;;  %s470_s7 = scalar_lea.vmem %s141_s4, 128 }
  0x16   : > { %p471_p3 = scmp.ne.s32.totalorder %s141_s4, %s470_s7  ;;  %s567_s8 = smov [#allocation2]  }
  0x17   : > { %s475_s15 = sshll.u32 %s567_s8, 4  ;;  %s476_s15 = int_to_ptr.vmem [resolvable:$false] %s475_s15 }
  0x18   : > { %p473_p5 = pnand %p471_p3, %p459_p2  ;;  %s477_s16 = scalar_lea.vmem %s476_s15, 256 }
  0x19   : > { %p478_p7 = scmp.lt.s32.totalorder %s141_s4, %s476_s15  ;;  %p479_p10 = scmp.lt.s32.totalorder %s477_s16, %s470_s7 }
  0x1a   : > { %p474_p6 = pneg %p473_p5 }
  0x1b   : > { %p480_p12 = por %p479_p10, %p478_p7 }
  0x1d   : > { %p481_p4 = pnand %p480_p12, %p474_p6 }
  0x1f   : > { %484 = shalt.err (!%p481_p4)
}
  0x20   : > { %s568_s18 = smov 32   ;;  %s569_s19 = smov 2  }
  0x21   : > { %393 = dma.hbm_to_vmem [thread:$0]  (!%p660_p0), %s139_s30, 128, %s141_s4, %s129_s6, %s568_s18, %s568_s18, %s569_s19  }
  0x22   : > { %p148_p13 = scmp.lt.s32.totalorder %s565_s14, 3 }
  0x24   : > { %p149_p2 = pnand %p372_p1, %p148_p13 }
  0x25   : > { %s673_s20 = sand.u32 (!%p149_p2), 1, %s549_s10  }
  0x26   : > { %152 = sbr.rel (%p149_p2) target bundleno = 192 (0xc0), region = 28  ;;  %s373_s25 = sshll.u32 (!%p149_p2), %s673_s20, 3 }
  0x27   : > { %s155_s26 = scalar_lea.sflag (!%p149_p2), [#allocation3], %s673_s20  ;;  %s158_s27 = scalar_lea.vmem (!%p149_p2), [#allocation2], %s373_s25 }
  0x2b   : > { %536 = dma.done.wait (%p636_p8), %s155_s26, 128  }
  0x2c   : > { %538 = vsyncadd (%p636_p8), %s155_s26, 4294967168  ;;  %v570_v0 = vmov 0   ;;  %v377_v1 = vld [vmem:[%s760_s1 + $0x2] ss:$0 sm:$0xff]  ;;  %v375_v2 = vld [vmem:[%s760_s1] ss:$0 sm:$0xff] }
  0x2d   : > { %454 = vset.pattern.permute.xlu1 %v570_v0  ;;  %453 = vset.pattern.permute.xlu0 %v570_v0  ;;  %v378_v3 = vld [vmem:[%s760_s1 + $0x3] ss:$0 sm:$0xff]  ;;  %v376_v4 = vld [vmem:[%s760_s1 + $0x1] ss:$0 sm:$0xff]  ;;  %vm187_vm0 = vcmask 1041408   ;;  %s178_s7 = scalar_lea.vmem [#allocation5], %s373_s25 }
  0x2e   : > { %242 = vperm.xlu1 %454, %v377_v1   ;;  %234 = vperm.xlu0 %453, %v375_v2   ;;  %v179_v5 = vld [vmem:[%s158_s27] sm:$0x3]  ;;  %v180_v6 = vld [vmem:[%s158_s27 + $0x2] sm:$0x3]  ;;  %v181_v11 = vld [vmem:[%s158_s27 + $0x4] sm:$0x3] }
  0x2f   : > { %v188_v7 = vsel %vm187_vm0, %v179_v5, 0.0  ;;  %v189_v8 = vsel %vm187_vm0, %v180_v6, 0.0  ;;  %v195_v9 = vmul.f32 %v179_v5, %v179_v5  ;;  %v196_v10 = vmul.f32 %v180_v6, %v180_v6  ;;  %v182_v17 = vld [vmem:[%s158_s27 + $0x6] sm:$0x3]  ;;  %s280_s8 = sshll.u32 %s178_s7, 4  ;;  %s385_s15 = sshll.u32 %s557_s12, 7  ;;  %s706_s8 = int_to_ptr.vmem [resolvable:$true] %s280_s8 }
  0x30   : > { %v190_v12 = vadd.f32 %v189_v8, %v188_v7  ;;  %v191_v13 = vsel %vm187_vm0, %v181_v11, 0.0  ;;  %v197_v14 = vmul.f32 %v181_v11, %v181_v11  ;;  %v193_v20 = vsel %vm187_vm0, %v182_v17, 0.0  ;;  %s711_s19 = scalar_lea.hbm %s761_s2, %s385_s15  ;;  %s266_s12 = scalar_lea.sflag [#allocation4], %s673_s20 }
  0x31   : > { %v199_v15 = vsel %vm187_vm0, %v195_v9, 0.0  ;;  %v200_v16 = vsel %vm187_vm0, %v196_v10, 0.0  ;;  %v198_v21 = vmul.f32 %v182_v17, %v182_v17  ;;  %s485_s25 = scalar_lea.vmem %s706_s8, 128  ;;  %s571_s26 = smov [#allocation5]  }
  0x32   : > { %246 = vperm.xlu1 %454, %v378_v3   ;;  %238 = vperm.xlu0 %453, %v376_v4   ;;  %v192_v18 = vadd.f32 %v191_v13, %v190_v12  ;;  %v201_v19 = vadd.f32 %v200_v16, %v199_v15  ;;  %v202_v22 = vsel %vm187_vm0, %v197_v14, 0.0  ;;  %p486_p8 = scmp.ne.s32.totalorder %s706_s8, %s485_s25  ;;  %s489_s27 = sshll.u32 %s571_s26, 4  ;;  %s490_s27 = int_to_ptr.vmem [resolvable:$false] %s489_s27 }
  0x33   : > { %v204_v25 = vsel %vm187_vm0, %v198_v21, 0.0  ;;  %s491_s28 = scalar_lea.vmem %s490_s27, 256  ;;  %p492_p1 = scmp.lt.s32.totalorder %s706_s8, %s490_s27 }
  0x34   : > { %v194_v23 = vadd.f32 %v193_v20, %v192_v18  ;;  %v203_v24 = vadd.f32 %v202_v22, %v201_v19  ;;  %p487_p12 = pnand %p486_p8, %p640_p9  ;;  %p493_p3 = scmp.lt.s32.totalorder %s491_s28, %s485_s25 }
  0x36   : > { %v205_v26 = vadd.f32 %v204_v25, %v203_v24  ;;  %v206_v27 = vmul.f32 0.25, %v194_v23  ;;  %p488_p0 = pneg %p487_p12  ;;  %p494_p5 = por %p493_p3, %p492_p1 }
  0x38   : > { %v207_v28 = vmul.f32 0.25, %v205_v26  ;;  %v208_v29 = vmul.f32 %v206_v27, %v206_v27  ;;  %v255_v34 = vsub.f32 %v181_v11, %v206_v27  ;;  %v253_v35 = vsub.f32 %v179_v5, %v206_v27  ;;  %p495_p6 = pnand %p494_p5, %p488_p0 }
  0x39   : > { %v256_v42 = vsub.f32 %v182_v17, %v206_v27  ;;  %v254_v43 = vsub.f32 %v180_v6, %v206_v27 }
  0x3a   : > { %v209_v30 = vsub.f32 %v207_v28, %v208_v29 }
  0x3c   : > { %v210_v31 = vmax.f32 %v209_v30, 0.0 }
  0x3e   : > { %v211_v32 = vadd.f32 1e-05, %v210_v31 }
  0x40   : > { %455 = vrsqrt.f32 %v211_v32 }
  0x4d   : > { %v456_v33 = vpop.eup %455 }
  0xa9   : > { %v243_v36 = vpop.permute.xlu1 %242  ;;  %v235_v37 = vpop.permute.xlu0 %234 }
  0xaa   : > { %v251_v38 = vmul.f32 %v456_v33, %v243_v36  ;;  %v249_v39 = vmul.f32 %v456_v33, %v235_v37 }
  0xac   : > { %v259_v40 = vmul.f32 %v255_v34, %v251_v38  ;;  %v257_v41 = vmul.f32 %v253_v35, %v249_v39 }
  0xad   : > { %v247_v44 = vpop.permute.xlu1 %246  ;;  %v239_v45 = vpop.permute.xlu0 %238 }
  0xae   : > { %263 = vst [vmem:[%s178_s7 + $0x4] sm:$0x3] %v259_v40  ;;  %261 = vst [vmem:[%s178_s7] sm:$0x3] %v257_v41  ;;  %v252_v46 = vmul.f32 %v456_v33, %v247_v44  ;;  %v250_v47 = vmul.f32 %v456_v33, %v239_v45 }
  0xb0   : > { %v260_v48 = vmul.f32 %v256_v42, %v252_v46  ;;  %v258_v49 = vmul.f32 %v254_v43, %v250_v47 }
  0xb2   : > { %264 = vst [vmem:[%s178_s7 + $0x6] sm:$0x3] %v260_v48  ;;  %262 = vst [vmem:[%s178_s7 + $0x2] sm:$0x3] %v258_v49 }
  0xb3   : > { %498 = shalt.err (!%p495_p6)
}
  0xb4   : > { %s499_s29 = scalar_lea.hbm %s711_s19, 128  ;;  %s503_s4 = scalar_lea.hbm %s761_s2, 256 }
  0xb5   : > { %p500_p7 = scmp.ne.s32.totalorder %s711_s19, %s499_s29  ;;  %p504_p13 = scmp.lt.s32.totalorder %s711_s19, %s761_s2 }
  0xb6   : > { %p505_p2 = scmp.lt.s32.totalorder %s503_s4, %s499_s29 }
  0xb7   : > { %p501_p10 = pnand %p500_p7, %p640_p9 }
  0xb8   : > { %p506_p8 = por %p505_p2, %p504_p13 }
  0xb9   : > { %p502_p4 = pneg %p501_p10 }
  0xbb   : > { %p507_p12 = pnand %p506_p8, %p502_p4 }
  0xbd   : > { %510 = shalt.err (!%p507_p12)
}
  0xbe   : > { %s572_s21 = smov 32   ;;  %s573_s7 = smov 2  }
  0xbf   : > { %388 = dma.vmem_to_hbm [thread:$0]  (%p640_p9), %s706_s8, 128, %s711_s19, %s266_s12, %s572_s21, %s572_s21, %s573_s7  }
  0xc0 PF: > { %s295_s15 = sand.u32 1, %s545_s9   ;;  %p767_p0 = scmp.ge.s32.totalorder %s565_s14, 2 }
  0xc1   : > { %s296_s16 = scalar_lea.sflag [#allocation4], %s295_s15 }
  0xc2   : > { %p395_p1 = pnand %p767_p0, %p647_p11 }
  0xc4   : > { %p396_p3 = pneg %p395_p1 }
  0xc6   : > { %540 = dma.done.wait (%p396_p3), %s296_s16, 128  }
  0xc7   : > { %542 = vsyncadd (%p396_p3), %s296_s16, 4294967168  ;;  %s18_s14 = sadd.s32 1, %s565_s14   ;;  %s768_s9 = smov %s549_s10 }
  0xc8   : > { %p15_p5 = scmp.ge.s32.totalorder %s18_s14, 4   ;;  %s769_s10 = smov %s553_s11 }
  0xc9   : > { %s770_s11 = smov %s645_s23  ;;  %s771_s12 = smov %s561_s13 }
  0xca   : > { %s772_s13 = smov %s774_s17  ;;  %17 = sbr.rel (!%p15_p5) target bundleno = 6 (0x6), region = 73 }
  0xcf   :  { %301 = vsyncpa [#allocation3], 1 }
  0xd0   :  { %303 = vsyncpa [#allocation3 + $0x1], 1 }
  0xd1   :  { %304 = vsyncpa [#allocation4], 1 }
  0xd2   :  { %306 = vsyncpa [#allocation4 + $0x1], 1 }

</bundles_post_ra>
